<compile_context>
chip_gen: v7x
topology: tpu7x:2x2x1
jax: 0.10.0
libtpu: 0.0.40
codegen_flags: <defaults>
</compile_context>

<pallas_src>
import functools

import jax
import jax.numpy as jnp
import numpy as np
from jax import lax
from jax.experimental import pallas as pl
from jax.experimental.pallas import tpu as pltpu


# ------------------------------ Pallas kernel ------------------------------ #
def _conv1d_kernel(x_ref, w_ref, b_ref, o_ref, *, kernel_size, stride, dilation,
                   l_out, use_bias):
    """One batch row: out = sum_k W_k @ x[:, taps_k] (+ bias). Everything in VMEM.

    x_ref : (C_in, L_pad)      padded input row
    w_ref : (K, C_out, C_in)   tap-major weight (no transpose needed in-kernel)
    b_ref : (C_out, 1)
    o_ref : (C_out, L_out)
    """
    acc = jnp.zeros(o_ref.shape, jnp.float32)
    for k in range(kernel_size):             # static unroll over taps (K is tiny)
        start = k * dilation
        if stride == 1:
            x_k = x_ref[:, pl.ds(start, l_out)]
        else:
            x_k = x_ref[:, pl.ds(start, l_out, stride=stride)]
        # (C_out, C_in) @ (C_in, L_out) -> (C_out, L_out) on the MXU.
        acc = acc + jnp.dot(w_ref[k], x_k, preferred_element_type=jnp.float32)
    if use_bias:
        acc = acc + b_ref[...]               # (C_out, 1) broadcast over lanes
    o_ref[...] = acc.astype(o_ref.dtype)


# --------------------------------- wrapper --------------------------------- #
def meta_conv1d(x, weight, bias=None, *, stride=1, padding=0, dilation=1, groups=1):
    """Pallas equivalent of MetaConv1dLayer.forward.

    x      : (B, C_in, L)       float32
    weight : (C_out, C_in, K)   PyTorch conv1d layout (external params allowed,
                                mirroring the `params` dict path of the module)
    bias   : (C_out,) or None
    """
    if groups != 1:
        # TODO(synk): grouped conv1d (groups > 1) not implemented in the kernel.
        raise NotImplementedError("meta_conv1d: groups != 1 is not supported")
    stride, padding, dilation = int(stride), int(padding), int(dilation)

    B, C_in, L = x.shape
    C_out, C_in_w, K = weight.shape
    assert C_in_w == C_in, "weight in_channels mismatch"
    L_out = (L + 2 * padding - dilation * (K - 1) - 1) // stride + 1
    assert L_out >= 1

    x_pad = jnp.pad(x, ((0, 0), (0, 0), (padding, padding))) if padding > 0 else x
    L_pad = L + 2 * padding

    # Pre-permute once so the kernel never transposes: (K, C_out, C_in).
    w_kio = jnp.transpose(weight, (2, 0, 1))
    use_bias = bias is not None
    b2d = (bias if use_bias else jnp.zeros((C_out,), x.dtype)).reshape(C_out, 1)

    kernel = functools.partial(
        _conv1d_kernel, kernel_size=K, stride=stride, dilation=dilation,
        l_out=L_out, use_bias=use_bias)

    return pl.pallas_call(
        kernel,
        out_shape=jax.ShapeDtypeStruct((B, C_out, L_out), x.dtype),
        grid_spec=pltpu.PrefetchScalarGridSpec(
            num_scalar_prefetch=0,
            grid=(B,),  # one grid step per batch row
            in_specs=[
                # batch dim squeezed out -> kernel sees (C_in, L_pad)
                pl.BlockSpec((None, C_in, L_pad), lambda b: (b, 0, 0)),
                # grid-invariant weights / bias: DMA'd once, resident in VMEM
                pl.BlockSpec((K, C_out, C_in), lambda b: (0, 0, 0)),
                pl.BlockSpec((C_out, 1), lambda b: (0, 0)),
            ],
            out_specs=pl.BlockSpec((None, C_out, L_out), lambda b: (b, 0, 0)),
        ),
        compiler_params=pltpu.CompilerParams(
            dimension_semantics=("parallel",)),   # megacore batch split on v7x
    )(x_pad, w_kio, b2d)


# -------------------------- pure-JAX reference ----------------------------- #
def conv1d_ref(x, weight, bias, stride, padding, dilation, groups):
    out = lax.conv_general_dilated(
        x, weight,
        window_strides=(stride,),
        padding=[(padding, padding)],
        rhs_dilation=(dilation,),
        dimension_numbers=("NCH", "OIH", "NCH"),
        feature_group_count=groups)
    if bias is not None:
        out = out + bias[None, :, None]
    return out


# ----------------------------------- main ----------------------------------- #
if __name__ == "__main__":
    # Small shapes consistent with the module's forward: x (B, C_in, L)
    B, C_in, C_out, L, K = 2, 4, 8, 16, 3
    stride, padding, dilation = 1, 1, 1

    key = jax.random.PRNGKey(0)
    kw, kb, kx = jax.random.split(key, 3)

    # xavier_uniform init on (C_out, C_in, K), like nn.init.xavier_uniform_
    fan_in, fan_out = C_in * K, C_out * K
    bound = float(np.sqrt(6.0 / (fan_in + fan_out)))
    weight = jax.random.uniform(kw, (C_out, C_in, K), jnp.float32, -bound, bound)
    bias = 0.1 * jax.random.normal(kb, (C_out,), jnp.float32)
    x = jax.random.normal(kx, (B, C_in, L), jnp.float32)

    out = meta_conv1d(x, weight, bias, stride=stride, padding=padding,
                      dilation=dilation, groups=1)
    out = jax.block_until_ready(out)

    ref = conv1d_ref(x, weight, bias, stride, padding, dilation, 1)
    assert out.shape == ref.shape == (B, C_out, (L + 2 * padding - dilation * (K - 1) - 1) // stride + 1)
    np.testing.assert_allclose(np.asarray(out), np.asarray(ref),
                               rtol=1e-5, atol=1e-5)
    print("KERNEL_OK")
</pallas_src>

<mosaic_0001>
module attributes {stable_mosaic.version = 11 : i64} {
  func.func @_conv1d_kernel(%arg0: i32, %arg1: memref<1x4x18xf32, #tpu.memory_space<vmem>>, %arg2: memref<3x8x4xf32, #tpu.memory_space<vmem>>, %arg3: memref<8x1xf32, #tpu.memory_space<vmem>>, %arg4: memref<1x8x16xf32, #tpu.memory_space<vmem>>) attributes {dimension_semantics = [#tpu.dimension_semantics<parallel>], iteration_bounds = array<i64: 2>, scalar_prefetch = 0 : i64, scratch_operands = 0 : i64, tpu.core_type = #tpu.core_type<tc>, window_params = [{transform_indices = @transform_0, window_bounds = array<i64: 1, 4, 18>}, {pipeline_mode = #tpu.pipeline_mode<synchronous>, transform_indices = @transform_1, window_bounds = array<i64: 3, 8, 4>}, {pipeline_mode = #tpu.pipeline_mode<synchronous>, transform_indices = @transform_2, window_bounds = array<i64: 8, 1>}, {transform_indices = @transform_3, window_bounds = array<i64: 1, 8, 16>}]} {
    %cst = arith.constant 0.000000e+00 : f32
    %0 = vector.broadcast %cst : f32 to vector<8x16xf32>
    %c0 = arith.constant 0 : index
    %c0_0 = arith.constant 0 : index
    %c0_1 = arith.constant 0 : index
    %1 = vector.load %arg1[%c0, %c0_0, %c0_1] : memref<1x4x18xf32, #tpu.memory_space<vmem>>, vector<1x4x16xf32>
    %2 = vector.shape_cast %1 : vector<1x4x16xf32> to vector<4x16xf32>
    %c0_2 = arith.constant 0 : index
    %c0_3 = arith.constant 0 : index
    %c0_4 = arith.constant 0 : index
    %3 = vector.load %arg2[%c0_2, %c0_3, %c0_4] : memref<3x8x4xf32, #tpu.memory_space<vmem>>, vector<1x8x4xf32>
    %4 = vector.shape_cast %3 : vector<1x8x4xf32> to vector<8x4xf32>
    %cst_5 = arith.constant dense<0.000000e+00> : vector<8x16xf32>
    %5 = tpu.matmul %4, %2, %cst_5 {dimension_numbers = #tpu.dot_dimension_numbers<[1], [0], [0], [1], [0, 0, 1, 1], [], []>} : vector<8x4xf32>, vector<4x16xf32>, vector<8x16xf32> -> vector<8x16xf32>
    %6 = arith.addf %0, %5 : vector<8x16xf32>
    %c0_6 = arith.constant 0 : index
    %c0_7 = arith.constant 0 : index
    %c1 = arith.constant 1 : index
    %7 = vector.load %arg1[%c0_6, %c0_7, %c1] : memref<1x4x18xf32, #tpu.memory_space<vmem>>, vector<1x4x16xf32>
    %8 = vector.shape_cast %7 : vector<1x4x16xf32> to vector<4x16xf32>
    %c1_8 = arith.constant 1 : index
    %c0_9 = arith.constant 0 : index
    %c0_10 = arith.constant 0 : index
    %9 = vector.load %arg2[%c1_8, %c0_9, %c0_10] : memref<3x8x4xf32, #tpu.memory_space<vmem>>, vector<1x8x4xf32>
    %10 = vector.shape_cast %9 : vector<1x8x4xf32> to vector<8x4xf32>
    %cst_11 = arith.constant dense<0.000000e+00> : vector<8x16xf32>
    %11 = tpu.matmul %10, %8, %cst_11 {dimension_numbers = #tpu.dot_dimension_numbers<[1], [0], [0], [1], [0, 0, 1, 1], [], []>} : vector<8x4xf32>, vector<4x16xf32>, vector<8x16xf32> -> vector<8x16xf32>
    %12 = arith.addf %6, %11 : vector<8x16xf32>
    %c0_12 = arith.constant 0 : index
    %c0_13 = arith.constant 0 : index
    %c2 = arith.constant 2 : index
    %13 = vector.load %arg1[%c0_12, %c0_13, %c2] : memref<1x4x18xf32, #tpu.memory_space<vmem>>, vector<1x4x16xf32>
    %14 = vector.shape_cast %13 : vector<1x4x16xf32> to vector<4x16xf32>
    %c2_14 = arith.constant 2 : index
    %c0_15 = arith.constant 0 : index
    %c0_16 = arith.constant 0 : index
    %15 = vector.load %arg2[%c2_14, %c0_15, %c0_16] : memref<3x8x4xf32, #tpu.memory_space<vmem>>, vector<1x8x4xf32>
    %16 = vector.shape_cast %15 : vector<1x8x4xf32> to vector<8x4xf32>
    %cst_17 = arith.constant dense<0.000000e+00> : vector<8x16xf32>
    %17 = tpu.matmul %16, %14, %cst_17 {dimension_numbers = #tpu.dot_dimension_numbers<[1], [0], [0], [1], [0, 0, 1, 1], [], []>} : vector<8x4xf32>, vector<4x16xf32>, vector<8x16xf32> -> vector<8x16xf32>
    %18 = arith.addf %12, %17 : vector<8x16xf32>
    %c0_18 = arith.constant 0 : index
    %c0_19 = arith.constant 0 : index
    %19 = vector.load %arg3[%c0_18, %c0_19] : memref<8x1xf32, #tpu.memory_space<vmem>>, vector<8x1xf32>
    %20 = vector.broadcast %19 : vector<8x1xf32> to vector<8x16xf32>
    %21 = arith.addf %18, %20 : vector<8x16xf32>
    %c0_20 = arith.constant 0 : index
    %c0_21 = arith.constant 0 : index
    %c0_22 = arith.constant 0 : index
    %22 = vector.load %arg4[%c0_20, %c0_21, %c0_22] : memref<1x8x16xf32, #tpu.memory_space<vmem>>, vector<1x8x16xf32>
    %23 = vector.shape_cast %22 : vector<1x8x16xf32> to vector<8x16xf32>
    %24 = vector.shape_cast %21 : vector<8x16xf32> to vector<1x8x16xf32>
    tpu.vector_store %arg4[%c0_20, %c0_21, %c0_22], %24 {strides = array<i32>} : memref<1x8x16xf32, #tpu.memory_space<vmem>>, vector<1x8x16xf32>,
    return
  }
  func.func @transform_0(%arg0: i32) -> (i32, i32, i32) {
    %c0_i32 = arith.constant 0 : i32
    %c0_i32_0 = arith.constant 0 : i32
    %c0_i32_1 = arith.constant 0 : i32
    return %arg0, %c0_i32, %c0_i32_0 : i32, i32, i32
  }
  func.func @transform_1(%arg0: i32) -> (i32, i32, i32) {
    %c0_i32 = arith.constant 0 : i32
    %c0_i32_0 = arith.constant 0 : i32
    %c0_i32_1 = arith.constant 0 : i32
    %c0_i32_2 = arith.constant 0 : i32
    return %c0_i32, %c0_i32_0, %c0_i32_1 : i32, i32, i32
  }
  func.func @transform_2(%arg0: i32) -> (i32, i32) {
    %c0_i32 = arith.constant 0 : i32
    %c0_i32_0 = arith.constant 0 : i32
    %c0_i32_1 = arith.constant 0 : i32
    return %c0_i32, %c0_i32_0 : i32, i32
  }
  func.func @transform_3(%arg0: i32) -> (i32, i32, i32) {
    %c0_i32 = arith.constant 0 : i32
    %c0_i32_0 = arith.constant 0 : i32
    %c0_i32_1 = arith.constant 0 : i32
    return %arg0, %c0_i32, %c0_i32_0 : i32, i32, i32
  }
}

</mosaic_0001>

<bundles_post_ra>
// kernel: tpu_custom_call.1
= control target key start
LH: loop header
LB: loop body
LE: loop exit
PB: predicated region body
PF: predicated region fallthrough
CT: control target
= control target key end

     0   :  { %8 = vsyncpa [#allocation3], 0  ;;  %s783_s0 = inlined_call_operand.vmem [shape: f32[2,4,18], index: 0, kind: input, shape index: {}]   ;;  %s784_s1 = inlined_call_operand.vmem [shape: f32[3,8,4], index: 1, kind: input, shape index: {}]   ;;  %s785_s2 = inlined_call_operand.vmem [shape: f32[8,1], index: 2, kind: input, shape index: {}]   ;;  %s786_s3 = inlined_call_operand.hbm [shape: f32[2,8,16], index: 3, kind: output, shape index: {}]  }
   0x1   :  { %10 = vsyncpa [#allocation3 + $0x1], 0  ;;  %s662_s12 = smov 0   ;;  %s664_s13 = smov 0  }
   0x2   :  { %s666_s14 = smov 0   ;;  %s668_s15 = smov 0  }
   0x3 LB: > { %s683_s16 = sadd.s32 4294967295, %s634_s15   ;;  %s487_s17 = sadd.s32 4294967294, %s634_s15   ;;  %s634_s15 = sphi %s668_s15, %s792_s15   ;;  %s630_s14 = sphi %s666_s14, %s791_s14   ;;  %s626_s13 = sphi %s664_s13, %s790_s13   ;;  %s622_s12 = sphi %s662_s12, %s789_s12  }
   0x4   : > { %s687_s18 = sadd.s32 1, %s634_s15   ;;  %s91_s19 = sadd.s32 1, %s630_s14 }
   0x5   : > { %s88_s20 = ssub.s32 %s634_s15, %s687_s18  ;;  %p101_p0 = scmp.ne.s32.totalorder %s630_s14, %s626_s13 }
   0x6   : > { %p89_p1 = scmp.eq.s32.totalorder %s88_s20, 0  ;;  %p102_p2 = scmp.eq.s32.totalorder %s683_s16, 1 }
   0x7   : > { %p107_p3 = scmp.ne.s32.totalorder %s626_s13, %s622_s12  ;;  %p108_p4 = scmp.eq.s32.totalorder %s487_s17, 1 }
   0x8   : > { %s698_s21 = scalar_select %p89_p1, %s630_s14, %s91_s19  }
   0x9   : > { %p700_p5 = por %p102_p2, %p101_p0  ;;  %p704_p6 = por %p108_p4, %p107_p3 }
   0xa   : > { %p490_p7 = scmp.ge.s32.totalorder %s634_s15, 1  ;;  %p139_p8 = scmp.lt.s32.totalorder %s634_s15, 3 }
   0xc   : > { %p140_p9 = pnand %p490_p7, %p139_p8 }
   0xd   : > { %p162_p10 = scmp.lt.s32.totalorder (!%p140_p9), %s683_s16, 1  ;;  %v636_v0 = vmov (!%p140_p9), 0.0   ;;  %vm637_vm0 = vmmov (!%p140_p9), 0   ;;  %v405_v1 = vld [vmem:[%s785_s2] sm:$0xff] (!%p140_p9)  ;;  %v638_v2 = vmov (!%p140_p9), 0   ;;  %vm177_vm1 = vcmask (!%p140_p9), 1043456  }
   0xe   : > { %143 = sbr.rel (%p140_p9) target bundleno = 376 (0x178), region = 32  ;;  %511 = vmatprep.subr.mxu0 (!%p140_p9), %v636_v0  ;;  %513 = vmatprep.mubr.msk.f32.mxu0 (!%p140_p9), %vm637_vm0, %v636_v0  ;;  %vm173_vm2 = vcmask (!%p140_p9), 31744   ;;  %v167_v3 = vld [vmem:[%s784_s1] sm:$0xff] (!%p140_p9)  ;;  %s639_s6 = smov (!%p140_p9), 127   ;;  %v493_v5 = vld [vmem:[%s784_s1 + $0x8] sm:$0xff] (!%p140_p9)  ;;  %v498_v7 = vld [vmem:[%s784_s1 + $0x10] sm:$0xff] (!%p140_p9) }
   0xf   : > { %516 = vmatprep.subr.mxu1 (!%p140_p9), %v636_v0  ;;  %518 = vmatprep.mubr.msk.f32.mxu1 (!%p140_p9), %vm637_vm0, %v636_v0  ;;  %s640_s7 = smov (!%p140_p9), 126   ;;  %s159_s17 = sand.u32 (!%p140_p9), 1, %s626_s13   ;;  %vm412_vm3 = vcmask (!%p140_p9), 130048  }
  0x10   : > { %570 = vset.pattern.permute.xlu1 (!%p140_p9), %v638_v2  ;;  %571 = vset.pattern.permute.xlu0 (!%p140_p9), %v638_v2  ;;  %s491_s19 = sshll.u32 (!%p140_p9), %s159_s17, 3  ;;  %s502_s20 = sshll.u32 (!%p140_p9), %s683_s16, 7 }
  0x11   : > { %408 = vperm.xlu1 (!%p140_p9), %570, %v405_v1   ;;  %s161_s24 = scalar_lea.vmem (!%p140_p9), [#allocation2], %s491_s19  ;;  %s741_s28 = scalar_lea.hbm (!%p140_p9), %s786_s3, %s502_s20 }
  0x12   : > { %s428_s25 = sshll.u32 (!%p140_p9), %s161_s24, 4  ;;  %s415_s29 = scalar_lea.sflag (!%p140_p9), [#allocation3], %s159_s17  ;;  %s743_s25 = int_to_ptr.vmem [resolvable:$true] %s428_s25 }
  0x15   : > { %s163_s26 = scalar_select %p162_p10, %s683_s16, 1 }
  0x16   : > { %s641_s16 = smov [#allocation2]  }
  0x17   : > { %s492_s27 = sshll.u32 %s163_s26, 2  ;;  %s576_s4 = sshll.u32 %s641_s16, 4  ;;  %s577_s4 = int_to_ptr.vmem [resolvable:$false] %s576_s4 }
  0x18   : > { %s165_s30 = scalar_lea.vmem %s783_s0, %s492_s27  ;;  %s578_s5 = scalar_lea.vmem %s577_s4, 256 }
  0x19   : > { %v166_v4 = vld [vmem:[%s165_s30] sm:$0xf]  ;;  %s572_s30 = scalar_lea.vmem %s743_s25, 128  ;;  %p579_p0 = scmp.lt.s32.totalorder %s743_s25, %s577_s4 }
  0x1a   : > { %171 = vrot.lane.b32.xlu0 %v166_v4, %s639_s6  ;;  %517 = vmatpush3.msk.msra.mxu1 %vm177_vm1, %v166_v4  ;;  %p573_p11 = scmp.ne.s32.totalorder %s743_s25, %s572_s30  ;;  %p580_p1 = scmp.lt.s32.totalorder %s578_s5, %s572_s30 }
  0x1b   : > { %519 = vmatmul.mubr.msk.f32.vlgmr.msra.gmra.mrb[0].mxu1 %vm173_vm2, %v167_v3 }
  0x1c   : > { %p574_p12 = pnand %p573_p11, %p700_p5  ;;  %p581_p2 = por %p580_p1, %p579_p0 }
  0x1e   : > { %327 = vrot.lane.b32.xlu0 %v166_v4, %s640_s7  ;;  %p575_p13 = pneg %p574_p12 }
  0x20   : > { %p582_p3 = pnand %p581_p2, %p575_p13 }
  0x8c   : > { %v172_v6 = vpop.permute.xlu0 %171 }
  0x8d   : > { %512 = vmatpush3.msk.msra.mxu0 %vm177_vm1, %v172_v6 }
  0x8e   : > { %514 = vmatmul.mubr.msk.f32.vlgmr.msra.gmra.mrb[0].mxu0 %vm173_vm2, %v493_v5  ;;  %521 = vmatprep.subr.mxu0 %v636_v0 }
  0x8f   : > { %523 = vmatprep.mubr.msk.f32.mxu0 %vm637_vm0, %v636_v0 }
  0x90   : > { %v328_v8 = vpop.permute.xlu0 %327  ;;  %v409_v15 = vpop.permute.xlu1 %408 }
  0x91   : > { %522 = vmatpush3.msk.msra.mxu0 %vm177_vm1, %v328_v8 }
  0x92   : > { %524 = vmatmul.mubr.msk.f32.vlgmr.msra.gmra.mrb[2].mxu0 %vm173_vm2, %v498_v7 }
  0xee   : > { %v321_v9 = vpop.f32.mrb[0].mxu1 }
  0xef   : > { %v520_v10 = vpop.f32.mrb[1].mxu1 }
 0x161   : > { %v246_v11 = vpop.f32.mrb[0].mxu0 }
 0x162   : > { %v515_v12 = vpop.f32.mrb[1].mxu0  ;;  %v322_v13 = vadd.f32 %v321_v9, %v246_v11 }
 0x165   : > { %v400_v14 = vpop.f32.mrb[2].mxu0 }
 0x166   : > { %v404_v16 = vadd.f32 %v400_v14, %v322_v13  ;;  %v525_v17 = vpop.f32.mrb[3].mxu0 }
 0x168   : > { %v411_v18 = vadd.f32 %v409_v15, %v404_v16 }
 0x16a   : > { %413 = vst.msk [vmem:[%s161_s24] sm:$0xff] %vm412_vm3, %v411_v18 }
 0x16b   : > { %585 = shalt.err (!%p582_p3)
}
 0x16c   : > { %s586_s6 = scalar_lea.hbm %s741_s28, 128  ;;  %s590_s9 = scalar_lea.hbm %s786_s3, 256 }
 0x16d   : > { %p587_p4 = scmp.ne.s32.totalorder %s741_s28, %s586_s6  ;;  %p591_p9 = scmp.lt.u32.totalorder %s741_s28, %s786_s3 }
 0x16e   : > { %p592_p10 = scmp.lt.u32.totalorder %s590_s9, %s586_s6  ;;  %p594_p12 = scmp.lt.u32.totalorder %s586_s6, %s741_s28 }
 0x16f   : > { %p588_p7 = pnand %p587_p4, %p700_p5 }
 0x170   : > { %p593_p11 = por %p592_p10, %p591_p9 }
 0x171   : > { %p589_p8 = pneg %p588_p7 }
 0x172   : > { %p595_p13 = por %p594_p12, %p593_p11 }
 0x174   : > { %p596_p0 = pnand %p595_p13, %p589_p8 }
 0x176   : > { %599 = shalt.err (!%p596_p0)
}
 0x177   : > { %526 = dma.vmem_to_hbm [thread:$0]  (%p700_p5), %s743_s25, 128, %s741_s28, %s415_s29  }
 0x178 PF: > { %p532_p1 = scmp.ge.s32.totalorder %s634_s15, 2  ;;  %s440_s17 = sand.u32 1, %s622_s12  }
 0x179   : > { %s441_s19 = scalar_lea.sflag [#allocation3], %s440_s17 }
 0x17a   : > { %p529_p2 = pnand %p532_p1, %p704_p6 }
 0x17c   : > { %617 = dma.done.wait (!%p529_p2), %s441_s19, 128  }
 0x17d   : > { %619 = vsyncadd (!%p529_p2), %s441_s19, 4294967168  ;;  %p13_p3 = scmp.ge.s32.totalorder %s687_s18, 4   ;;  %s789_s12 = smov %s626_s13 }
 0x17e   : > { %s790_s13 = smov %s630_s14  ;;  %s791_s14 = smov %s698_s21 }
 0x17f   : > { %s792_s15 = smov %s687_s18  ;;  %15 = sbr.rel (!%p13_p3) target bundleno = 3 (0x3), region = 69 }
 0x186   :  { %446 = vsyncpa [#allocation3], 1 }
 0x187   :  { %448 = vsyncpa [#allocation3 + $0x1], 1 }

</bundles_post_ra>
